<compile_context>
chip_gen: v7x
topology: tpu7x:2x2x1
jax: 0.10.0
libtpu: 0.0.40
codegen_flags: <defaults>
</compile_context>

<pallas_src>
import jax
import jax.numpy as jnp
from jax.experimental import pallas as pl
from jax.experimental.pallas import tpu as pltpu


def _identity_dma_kernel(x_hbm_ref, o_hbm_ref, copy_sem):
    # One whole-array HBM -> HBM DMA.  No VMEM staging, no vector loads/stores.
    cp = pltpu.make_async_copy(x_hbm_ref, o_hbm_ref, copy_sem)
    cp.start()
    cp.wait()


def identity_pallas(x):
    """Identity forward pass of Test_Model_Identical as a Pallas kernel."""
    bytes_moved = 2 * x.size * jnp.dtype(x.dtype).itemsize  # read + write
    return pl.pallas_call(
        _identity_dma_kernel,
        out_shape=jax.ShapeDtypeStruct(x.shape, x.dtype),
        # Leave both arrays in HBM; the kernel body drives the DMA itself.
        in_specs=[pl.BlockSpec(memory_space=pl.ANY)],
        out_specs=pl.BlockSpec(memory_space=pl.ANY),
        scratch_shapes=[pltpu.SemaphoreType.DMA],
        cost_estimate=pl.CostEstimate(
            flops=0, transcendentals=0, bytes_accessed=bytes_moved
        ),
    )(x)


def init_params(key):
    """Deterministic init of the (unused) Conv2d(10, 10, 3) parameters.

    They exist in the module's __init__ but are never used in forward().
    Included only so parameter shapes match the reference module.
    """
    k_w, k_b = jax.random.split(key)
    fan_in = 10 * 3 * 3
    bound = 1.0 / jnp.sqrt(fan_in)
    conv_w = jax.random.uniform(k_w, (10, 10, 3, 3), jnp.float32, -bound, bound)
    conv_b = jax.random.uniform(k_b, (10,), jnp.float32, -bound, bound)
    return {"conv_w": conv_w, "conv_b": conv_b}


if __name__ == "__main__":
    key = jax.random.PRNGKey(0)
    k_params, k_x = jax.random.split(key)

    _params = init_params(k_params)  # defined but unused, matching the module

    # NCHW input consistent with a Conv2d(10, 10, 3) module (C=10).
    x = jax.random.normal(k_x, (2, 10, 16, 16), dtype=jnp.float32)

    y = identity_pallas(x)
    y = jax.block_until_ready(y)

    assert y.shape == x.shape and y.dtype == x.dtype
    assert bool(jnp.all(y == x))

    print("KERNEL_OK")
</pallas_src>

<mosaic_0001>
module attributes {stable_mosaic.version = 11 : i64} {
  func.func @_identity_dma_kernel(%arg0: memref<2x10x16x16xf32, #tpu.memory_space<any>>, %arg1: memref<2x10x16x16xf32, #tpu.memory_space<any>>, %arg2: memref<!tpu.dma_semaphore, #tpu.memory_space<semaphore_mem>>) attributes {dimension_semantics = [], scalar_prefetch = 0 : i64, scratch_operands = 1 : i64, tpu.core_type = #tpu.core_type<tc>} {
    tpu.enqueue_dma source(%arg0 : memref<2x10x16x16xf32, #tpu.memory_space<any>>) target(%arg1 : memref<2x10x16x16xf32, #tpu.memory_space<any>>) target_semaphore(%arg2 : memref<!tpu.dma_semaphore, #tpu.memory_space<semaphore_mem>>)
    tpu.wait_dma2 semaphore(%arg2 : memref<!tpu.dma_semaphore, #tpu.memory_space<semaphore_mem>>) src(%arg0 : memref<2x10x16x16xf32, #tpu.memory_space<any>>) dst(%arg1 : memref<2x10x16x16xf32, #tpu.memory_space<any>>)
    return
  }
}

</mosaic_0001>

<bundles_post_ra>
// kernel: tpu_custom_call.1
= control target key start
LH: loop header
LB: loop body
LE: loop exit
PB: predicated region body
PF: predicated region fallthrough
CT: control target
= control target key end

     0   :  { %s36_s6 = smov [#allocation2]   ;;  %s37_s7 = smov [#allocation3]   ;;  %s55_s0 = inlined_call_operand.hbm [shape: f32[2,10,16,16], index: 0, kind: input, shape index: {}]   ;;  %s56_s1 = inlined_call_operand.hbm [shape: f32[2,10,16,16], index: 1, kind: output, shape index: {}]  }
   0x1   :  { %s38_s8 = smov 0  }
   0x2   :  { %18 = dma.general %s55_s0, 5120, %s56_s1, %s36_s6, %s37_s7, [#allocation4], %s38_s8, 0  }
   0x3   :  { %34 = dma.done.wait [#allocation2], 5120 }
   0x4   :  { %35 = vsyncadd [#allocation2], 4294962176 }
   0x5   :  { %24 = vsyncmov [#allocation2] }
   0x8   :  { %s25_s13 = vpop.sfrf %24 }
   0x9   :  { %p30_p0 = scmp.ne.s32.totalorder %s25_s13, 0 }
   0xb   :  { %29 = shalt.err (%p30_p0)  }

</bundles_post_ra>
